<compile_context>
chip_gen: v7x
topology: tpu7x:2x2x1
jax: 0.10.0
libtpu: 0.0.40
codegen_flags: <defaults>
</compile_context>

<pallas_src>
import functools

import jax
import jax.numpy as jnp
from jax.experimental import pallas as pl
from jax.experimental.pallas import tpu as pltpu

_HEAD_PAD = 8  # V, pi, c heads padded up to 8 sublanes


def _round_up(a, m):
    return ((a + m - 1) // m) * m


def _cdiv(a, b):
    return -(-a // b)


def _get_activation(name):
    name = name.lower()
    if name == "tanh":
        return jnp.tanh
    elif name == "relu":
        return lambda v: jnp.maximum(v, 0.0)
    elif name == "softplus":
        return jax.nn.softplus
    else:
        raise ValueError(f"Unsupported activation: {name}")


def _pinn_kernel(xt_ref, w0t_ref, b0t_ref, wht_ref, bht_ref, whdt_ref, bhdt_ref,
                 out_ref, *, n_hidden_layers, act):
    # Feature-major: activations are (H_pad, tile_b); batch rides the lanes.
    # Dot operands are cast to the weight dtype (f32 by default, bf16 if the
    # prepared params were cast); bias add / activation / accumulation stay f32.
    h = act(
        jnp.dot(w0t_ref[...], xt_ref[...].astype(w0t_ref.dtype),
                preferred_element_type=jnp.float32)
        + b0t_ref[...]
    )
    # Small static trip-count -> unrolled (LLO sees the whole schedule).
    # Note: with softplus, zero-padded hidden rows evaluate to ln(2) != 0,
    # but they stay inert because the next layer's / heads' padded weight
    # columns are exactly zero.
    for l in range(n_hidden_layers):
        h = act(
            jnp.dot(wht_ref[l], h.astype(wht_ref.dtype),
                    preferred_element_type=jnp.float32)
            + bht_ref[l]
        )
    # Fused heads: rows 0..2 of the (8, tile_b) output are [V, pi, c].
    out_ref[...] = (
        jnp.dot(whdt_ref[...], h.astype(whdt_ref.dtype),
                preferred_element_type=jnp.float32)
        + bhdt_ref[...]
    ).astype(out_ref.dtype)


def prepare_params(params, n_hidden_layers, dtype=jnp.float32):
    """One-time layout plumbing (hoisted out of the per-call path).

    Transposes the weights to feature-major and zero-pads the hidden width to
    a multiple of 8 sublanes and the input width to a multiple of 8.  Call
    once after init / load and reuse the result for every forward.
    """
    w0, b0, wh, bh, whd, bhd = params
    D_in, H = w0.shape
    L = n_hidden_layers
    H_pad = _round_up(H, 8)
    D_pad = _round_up(D_in, 8)

    w0t = jnp.zeros((H_pad, D_pad), dtype).at[:H, :D_in].set(w0.T.astype(dtype))
    b0t = jnp.zeros((H_pad, 1), jnp.float32).at[:H, :].set(
        b0.reshape(H, 1).astype(jnp.float32))
    if L > 0:
        wht = jnp.zeros((L, H_pad, H_pad), dtype).at[:, :H, :H].set(
            jnp.swapaxes(wh, 1, 2).astype(dtype))
        bht = jnp.zeros((L, H_pad, 1), jnp.float32).at[:, :H, :].set(
            bh.reshape(L, H, 1).astype(jnp.float32))
    else:
        # Tiny dummies (never read by the kernel when L == 0).
        wht = jnp.zeros((1, 8, 8), dtype)
        bht = jnp.zeros((1, 8, 1), jnp.float32)
    whdt = jnp.zeros((_HEAD_PAD, H_pad), dtype).at[:3, :H].set(whd.T.astype(dtype))
    bhdt = jnp.zeros((_HEAD_PAD, 1), jnp.float32).at[:3, :].set(
        bhd.reshape(3, 1).astype(jnp.float32))

    return (w0t, b0t, wht, bht, whdt, bhdt)


def pinn_with_controls_forward(x, prepared_params, *, n_hidden_layers,
                               activation="tanh", tile_b=1024):
    """x: (B, input_dim) f32.  prepared_params from prepare_params().

    Returns (V, pi, c), each (B, 1) f32.
    """
    w0t, b0t, wht, bht, whdt, bhdt = prepared_params
    B, D_in = x.shape
    H_pad, D_pad = w0t.shape
    L = n_hidden_layers

    # ---- Batch tiling: big lane-dense tiles (amortize ~0.35us/step); never
    #      pad a small batch to a huge tile; any batch >= 256 gets >= 2
    #      parallel tiles so the v7x megacore can split the batch axis. ----
    B8 = _round_up(B, 8)
    if B8 < 256:
        tb = B8                                   # single tile == whole batch
    else:
        n_tiles = max(2, _cdiv(B8, tile_b))
        tb = _round_up(_cdiv(B8, n_tiles), 128)   # lane-dense multiple of 128
    B_pad = _round_up(B8, tb)

    # Per-call input plumbing only: feature-major x, zero-padded rows/cols.
    xt = jnp.zeros((D_pad, B_pad), jnp.float32).at[:D_in, :B].set(
        x.T.astype(jnp.float32))

    grid = (B_pad // tb,)
    kernel = functools.partial(_pinn_kernel, n_hidden_layers=L,
                               act=_get_activation(activation))

    act_name = activation.lower()
    n_act = B_pad * H_pad * (L + 1)
    n_bytes = sum(int(a.size) * a.dtype.itemsize
                  for a in (xt, w0t, b0t, wht, bht, whdt, bhdt))
    cost = pl.CostEstimate(
        flops=2 * B_pad * (H_pad * D_pad + L * H_pad * H_pad + _HEAD_PAD * H_pad),
        transcendentals=n_act if act_name in ("tanh", "softplus") else 0,
        bytes_accessed=n_bytes + 4 * _HEAD_PAD * B_pad,
    )

    out = pl.pallas_call(
        kernel,
        out_shape=jax.ShapeDtypeStruct((_HEAD_PAD, B_pad), jnp.float32),
        grid_spec=pltpu.PrefetchScalarGridSpec(
            num_scalar_prefetch=0,
            grid=grid,
            in_specs=[
                pl.BlockSpec((D_pad, tb), lambda i: (0, i)),                      # x^T tile
                pl.BlockSpec((H_pad, D_pad), lambda i: (0, 0)),                   # W0^T
                pl.BlockSpec((H_pad, 1), lambda i: (0, 0)),                       # b0
                pl.BlockSpec(wht.shape, lambda i: (0, 0, 0)),                     # Wh^T stack
                pl.BlockSpec(bht.shape, lambda i: (0, 0, 0)),                     # bh stack
                pl.BlockSpec((_HEAD_PAD, H_pad), lambda i: (0, 0)),               # fused head W^T
                pl.BlockSpec((_HEAD_PAD, 1), lambda i: (0, 0)),                   # fused head b
            ],
            out_specs=pl.BlockSpec((_HEAD_PAD, tb), lambda i: (0, i)),
        ),
        compiler_params=pltpu.CompilerParams(
            dimension_semantics=("parallel",),
        ),
        cost_estimate=cost,
    )(xt, w0t, b0t, wht, bht, whdt, bhdt)

    V = out[0:1, :B].T
    pi = out[1:2, :B].T
    c = out[2:3, :B].T
    return V, pi, c


def init_params(key, input_dim, hidden_dim, n_hidden_layers):
    """Deterministic init mimicking PyTorch nn.Linear (U(-1/sqrt(fan_in), +))."""
    n_linears = 1 + n_hidden_layers + 3
    keys = jax.random.split(key, 2 * n_linears)
    ki = iter(keys)

    def linear(fan_in, fan_out):
        kw, kb = next(ki), next(ki)
        bound = 1.0 / jnp.sqrt(jnp.float32(fan_in))
        w = jax.random.uniform(kw, (fan_in, fan_out), jnp.float32, -bound, bound)
        b = jax.random.uniform(kb, (1, fan_out), jnp.float32, -bound, bound)
        return w, b

    w0, b0 = linear(input_dim, hidden_dim)

    wh_list, bh_list = [], []
    for _ in range(n_hidden_layers):
        w, b = linear(hidden_dim, hidden_dim)
        wh_list.append(w)
        bh_list.append(b)
    if n_hidden_layers > 0:
        wh = jnp.stack(wh_list, axis=0)           # (L, H, H)
        bh = jnp.stack(bh_list, axis=0)           # (L, 1, H)
    else:
        wh = jnp.zeros((0, hidden_dim, hidden_dim), jnp.float32)
        bh = jnp.zeros((0, 1, hidden_dim), jnp.float32)

    # Three scalar heads fused: columns [V, pi, c]
    wv, bv = linear(hidden_dim, 1)
    wp, bp = linear(hidden_dim, 1)
    wc, bc = linear(hidden_dim, 1)
    whd = jnp.concatenate([wv, wp, wc], axis=1)   # (H, 3)
    bhd = jnp.concatenate([bv, bp, bc], axis=1)   # (1, 3)

    return (w0, b0, wh, bh, whd, bhd)


def reference_forward(x, params, n_hidden_layers, activation="tanh"):
    """Pure-JAX reference for correctness check."""
    w0, b0, wh, bh, whd, bhd = params
    act = _get_activation(activation)
    h = act(x @ w0 + b0)
    for l in range(n_hidden_layers):
        h = act(h @ wh[l] + bh[l])
    out = h @ whd + bhd
    return out[:, 0:1], out[:, 1:2], out[:, 2:3]


if __name__ == "__main__":
    key = jax.random.PRNGKey(0)
    batch = 256            # >= 256 -> 2 lane-dense tiles (v7x megacore path)
    input_dim = 4          # e.g. (t, W, extra state dims)
    hidden_dim = 64
    n_hidden_layers = 4

    k_x, k_p = jax.random.split(key)
    x = jax.random.normal(k_x, (batch, input_dim), jnp.float32)
    params = init_params(k_p, input_dim, hidden_dim, n_hidden_layers)

    # One-time weight layout plumbing, hoisted out of the forward path.
    prepared = prepare_params(params, n_hidden_layers)

    V, pi, c = pinn_with_controls_forward(x, prepared,
                                          n_hidden_layers=n_hidden_layers)
    jax.block_until_ready((V, pi, c))

    V_ref, pi_ref, c_ref = reference_forward(x, params, n_hidden_layers)
    assert V.shape == (batch, 1) and pi.shape == (batch, 1) and c.shape == (batch, 1)
    assert jnp.allclose(V, V_ref, atol=1e-4)
    assert jnp.allclose(pi, pi_ref, atol=1e-4)
    assert jnp.allclose(c, c_ref, atol=1e-4)

    # Also exercise the small single-tile path (B < 256).
    x_small = x[:16]
    Vs, pis, cs = pinn_with_controls_forward(x_small, prepared,
                                             n_hidden_layers=n_hidden_layers)
    jax.block_until_ready((Vs, pis, cs))
    assert jnp.allclose(Vs, V_ref[:16], atol=1e-4)
    assert jnp.allclose(pis, pi_ref[:16], atol=1e-4)
    assert jnp.allclose(cs, c_ref[:16], atol=1e-4)

    print("KERNEL_OK")
</pallas_src>

<mosaic_0001>
module attributes {stable_mosaic.version = 11 : i64} {
  func.func @_pinn_kernel(%arg0: i32, %arg1: memref<8x128xf32, #tpu.memory_space<vmem>>, %arg2: memref<64x8xf32, #tpu.memory_space<vmem>>, %arg3: memref<64x1xf32, #tpu.memory_space<vmem>>, %arg4: memref<4x64x64xf32, #tpu.memory_space<vmem>>, %arg5: memref<4x64x1xf32, #tpu.memory_space<vmem>>, %arg6: memref<8x64xf32, #tpu.memory_space<vmem>>, %arg7: memref<8x1xf32, #tpu.memory_space<vmem>>, %arg8: memref<8x128xf32, #tpu.memory_space<vmem>>) attributes {dimension_semantics = [#tpu.dimension_semantics<parallel>], iteration_bounds = array<i64: 2>, scalar_prefetch = 0 : i64, scratch_operands = 0 : i64, tpu.core_type = #tpu.core_type<tc>, window_params = [{transform_indices = @transform_0, window_bounds = array<i64: 8, 128>}, {pipeline_mode = #tpu.pipeline_mode<synchronous>, transform_indices = @transform_1, window_bounds = array<i64: 64, 8>}, {pipeline_mode = #tpu.pipeline_mode<synchronous>, transform_indices = @transform_2, window_bounds = array<i64: 64, 1>}, {pipeline_mode = #tpu.pipeline_mode<synchronous>, transform_indices = @transform_3, window_bounds = array<i64: 4, 64, 64>}, {pipeline_mode = #tpu.pipeline_mode<synchronous>, transform_indices = @transform_4, window_bounds = array<i64: 4, 64, 1>}, {pipeline_mode = #tpu.pipeline_mode<synchronous>, transform_indices = @transform_5, window_bounds = array<i64: 8, 64>}, {pipeline_mode = #tpu.pipeline_mode<synchronous>, transform_indices = @transform_6, window_bounds = array<i64: 8, 1>}, {transform_indices = @transform_7, window_bounds = array<i64: 8, 128>}]} {
    %c0 = arith.constant 0 : index
    %c0_0 = arith.constant 0 : index
    %0 = vector.load %arg2[%c0, %c0_0] : memref<64x8xf32, #tpu.memory_space<vmem>>, vector<64x8xf32>
    %c0_1 = arith.constant 0 : index
    %c0_2 = arith.constant 0 : index
    %1 = vector.load %arg1[%c0_1, %c0_2] : memref<8x128xf32, #tpu.memory_space<vmem>>, vector<8x128xf32>
    %cst = arith.constant dense<0.000000e+00> : vector<64x128xf32>
    %2 = tpu.matmul %0, %1, %cst {dimension_numbers = #tpu.dot_dimension_numbers<[1], [0], [0], [1], [0, 0, 1, 1], [], []>} : vector<64x8xf32>, vector<8x128xf32>, vector<64x128xf32> -> vector<64x128xf32>
    %c0_3 = arith.constant 0 : index
    %c0_4 = arith.constant 0 : index
    %3 = vector.load %arg3[%c0_3, %c0_4] : memref<64x1xf32, #tpu.memory_space<vmem>>, vector<64x1xf32>
    %4 = vector.broadcast %3 : vector<64x1xf32> to vector<64x128xf32>
    %5 = arith.addf %2, %4 : vector<64x128xf32>
    %6 = math.tanh %5 : vector<64x128xf32>
    %c0_5 = arith.constant 0 : index
    %c0_6 = arith.constant 0 : index
    %c0_7 = arith.constant 0 : index
    %7 = vector.load %arg4[%c0_5, %c0_6, %c0_7] : memref<4x64x64xf32, #tpu.memory_space<vmem>>, vector<1x64x64xf32>
    %8 = vector.shape_cast %7 : vector<1x64x64xf32> to vector<64x64xf32>
    %cst_8 = arith.constant dense<0.000000e+00> : vector<64x128xf32>
    %9 = tpu.matmul %8, %6, %cst_8 {dimension_numbers = #tpu.dot_dimension_numbers<[1], [0], [0], [1], [0, 0, 1, 1], [], []>} : vector<64x64xf32>, vector<64x128xf32>, vector<64x128xf32> -> vector<64x128xf32>
    %c0_9 = arith.constant 0 : index
    %c0_10 = arith.constant 0 : index
    %c0_11 = arith.constant 0 : index
    %10 = vector.load %arg5[%c0_9, %c0_10, %c0_11] : memref<4x64x1xf32, #tpu.memory_space<vmem>>, vector<1x64x1xf32>
    %11 = vector.shape_cast %10 : vector<1x64x1xf32> to vector<64x1xf32>
    %12 = vector.broadcast %11 : vector<64x1xf32> to vector<64x128xf32>
    %13 = arith.addf %9, %12 : vector<64x128xf32>
    %14 = math.tanh %13 : vector<64x128xf32>
    %c1 = arith.constant 1 : index
    %c0_12 = arith.constant 0 : index
    %c0_13 = arith.constant 0 : index
    %15 = vector.load %arg4[%c1, %c0_12, %c0_13] : memref<4x64x64xf32, #tpu.memory_space<vmem>>, vector<1x64x64xf32>
    %16 = vector.shape_cast %15 : vector<1x64x64xf32> to vector<64x64xf32>
    %cst_14 = arith.constant dense<0.000000e+00> : vector<64x128xf32>
    %17 = tpu.matmul %16, %14, %cst_14 {dimension_numbers = #tpu.dot_dimension_numbers<[1], [0], [0], [1], [0, 0, 1, 1], [], []>} : vector<64x64xf32>, vector<64x128xf32>, vector<64x128xf32> -> vector<64x128xf32>
    %c1_15 = arith.constant 1 : index
    %c0_16 = arith.constant 0 : index
    %c0_17 = arith.constant 0 : index
    %18 = vector.load %arg5[%c1_15, %c0_16, %c0_17] : memref<4x64x1xf32, #tpu.memory_space<vmem>>, vector<1x64x1xf32>
    %19 = vector.shape_cast %18 : vector<1x64x1xf32> to vector<64x1xf32>
    %20 = vector.broadcast %19 : vector<64x1xf32> to vector<64x128xf32>
    %21 = arith.addf %17, %20 : vector<64x128xf32>
    %22 = math.tanh %21 : vector<64x128xf32>
    %c2 = arith.constant 2 : index
    %c0_18 = arith.constant 0 : index
    %c0_19 = arith.constant 0 : index
    %23 = vector.load %arg4[%c2, %c0_18, %c0_19] : memref<4x64x64xf32, #tpu.memory_space<vmem>>, vector<1x64x64xf32>
    %24 = vector.shape_cast %23 : vector<1x64x64xf32> to vector<64x64xf32>
    %cst_20 = arith.constant dense<0.000000e+00> : vector<64x128xf32>
    %25 = tpu.matmul %24, %22, %cst_20 {dimension_numbers = #tpu.dot_dimension_numbers<[1], [0], [0], [1], [0, 0, 1, 1], [], []>} : vector<64x64xf32>, vector<64x128xf32>, vector<64x128xf32> -> vector<64x128xf32>
    %c2_21 = arith.constant 2 : index
    %c0_22 = arith.constant 0 : index
    %c0_23 = arith.constant 0 : index
    %26 = vector.load %arg5[%c2_21, %c0_22, %c0_23] : memref<4x64x1xf32, #tpu.memory_space<vmem>>, vector<1x64x1xf32>
    %27 = vector.shape_cast %26 : vector<1x64x1xf32> to vector<64x1xf32>
    %28 = vector.broadcast %27 : vector<64x1xf32> to vector<64x128xf32>
    %29 = arith.addf %25, %28 : vector<64x128xf32>
    %30 = math.tanh %29 : vector<64x128xf32>
    %c3 = arith.constant 3 : index
    %c0_24 = arith.constant 0 : index
    %c0_25 = arith.constant 0 : index
    %31 = vector.load %arg4[%c3, %c0_24, %c0_25] : memref<4x64x64xf32, #tpu.memory_space<vmem>>, vector<1x64x64xf32>
    %32 = vector.shape_cast %31 : vector<1x64x64xf32> to vector<64x64xf32>
    %cst_26 = arith.constant dense<0.000000e+00> : vector<64x128xf32>
    %33 = tpu.matmul %32, %30, %cst_26 {dimension_numbers = #tpu.dot_dimension_numbers<[1], [0], [0], [1], [0, 0, 1, 1], [], []>} : vector<64x64xf32>, vector<64x128xf32>, vector<64x128xf32> -> vector<64x128xf32>
    %c3_27 = arith.constant 3 : index
    %c0_28 = arith.constant 0 : index
    %c0_29 = arith.constant 0 : index
    %34 = vector.load %arg5[%c3_27, %c0_28, %c0_29] : memref<4x64x1xf32, #tpu.memory_space<vmem>>, vector<1x64x1xf32>
    %35 = vector.shape_cast %34 : vector<1x64x1xf32> to vector<64x1xf32>
    %36 = vector.broadcast %35 : vector<64x1xf32> to vector<64x128xf32>
    %37 = arith.addf %33, %36 : vector<64x128xf32>
    %38 = math.tanh %37 : vector<64x128xf32>
    %c0_30 = arith.constant 0 : index
    %c0_31 = arith.constant 0 : index
    %39 = vector.load %arg6[%c0_30, %c0_31] : memref<8x64xf32, #tpu.memory_space<vmem>>, vector<8x64xf32>
    %cst_32 = arith.constant dense<0.000000e+00> : vector<8x128xf32>
    %40 = tpu.matmul %39, %38, %cst_32 {dimension_numbers = #tpu.dot_dimension_numbers<[1], [0], [0], [1], [0, 0, 1, 1], [], []>} : vector<8x64xf32>, vector<64x128xf32>, vector<8x128xf32> -> vector<8x128xf32>
    %c0_33 = arith.constant 0 : index
    %c0_34 = arith.constant 0 : index
    %41 = vector.load %arg7[%c0_33, %c0_34] : memref<8x1xf32, #tpu.memory_space<vmem>>, vector<8x1xf32>
    %42 = vector.broadcast %41 : vector<8x1xf32> to vector<8x128xf32>
    %43 = arith.addf %40, %42 : vector<8x128xf32>
    %c0_35 = arith.constant 0 : index
    %c0_36 = arith.constant 0 : index
    %44 = vector.load %arg8[%c0_35, %c0_36] : memref<8x128xf32, #tpu.memory_space<vmem>>, vector<8x128xf32>
    tpu.vector_store %arg8[%c0_35, %c0_36], %43 {strides = array<i32>} : memref<8x128xf32, #tpu.memory_space<vmem>>, vector<8x128xf32>,
    return
  }
  func.func @transform_0(%arg0: i32) -> (i32, i32) {
    %c0_i32 = arith.constant 0 : i32
    %c0_i32_0 = arith.constant 0 : i32
    return %c0_i32, %arg0 : i32, i32
  }
  func.func @transform_1(%arg0: i32) -> (i32, i32) {
    %c0_i32 = arith.constant 0 : i32
    %c0_i32_0 = arith.constant 0 : i32
    %c0_i32_1 = arith.constant 0 : i32
    return %c0_i32, %c0_i32_0 : i32, i32
  }
  func.func @transform_2(%arg0: i32) -> (i32, i32) {
    %c0_i32 = arith.constant 0 : i32
    %c0_i32_0 = arith.constant 0 : i32
    %c0_i32_1 = arith.constant 0 : i32
    return %c0_i32, %c0_i32_0 : i32, i32
  }
  func.func @transform_3(%arg0: i32) -> (i32, i32, i32) {
    %c0_i32 = arith.constant 0 : i32
    %c0_i32_0 = arith.constant 0 : i32
    %c0_i32_1 = arith.constant 0 : i32
    %c0_i32_2 = arith.constant 0 : i32
    return %c0_i32, %c0_i32_0, %c0_i32_1 : i32, i32, i32
  }
  func.func @transform_4(%arg0: i32) -> (i32, i32, i32) {
    %c0_i32 = arith.constant 0 : i32
    %c0_i32_0 = arith.constant 0 : i32
    %c0_i32_1 = arith.constant 0 : i32
    %c0_i32_2 = arith.constant 0 : i32
    return %c0_i32, %c0_i32_0, %c0_i32_1 : i32, i32, i32
  }
  func.func @transform_5(%arg0: i32) -> (i32, i32) {
    %c0_i32 = arith.constant 0 : i32
    %c0_i32_0 = arith.constant 0 : i32
    %c0_i32_1 = arith.constant 0 : i32
    return %c0_i32, %c0_i32_0 : i32, i32
  }
  func.func @transform_6(%arg0: i32) -> (i32, i32) {
    %c0_i32 = arith.constant 0 : i32
    %c0_i32_0 = arith.constant 0 : i32
    %c0_i32_1 = arith.constant 0 : i32
    return %c0_i32, %c0_i32_0 : i32, i32
  }
  func.func @transform_7(%arg0: i32) -> (i32, i32) {
    %c0_i32 = arith.constant 0 : i32
    %c0_i32_0 = arith.constant 0 : i32
    return %c0_i32, %arg0 : i32, i32
  }
}

</mosaic_0001>

<bundles_post_ra>
// kernel: tpu_custom_call.1
= control target key start
LH: loop header
LB: loop body
LE: loop exit
PB: predicated region body
PF: predicated region fallthrough
CT: control target
= control target key end

     0   :  { %12 = vsyncpa [#allocation3], 0  ;;  %s2425_s0 = inlined_call_operand.vmem [shape: f32[8,256], index: 0, kind: input, shape index: {}]   ;;  %s2426_s1 = inlined_call_operand.vmem [shape: f32[64,8], index: 1, kind: input, shape index: {}]   ;;  %s2427_s2 = inlined_call_operand.vmem [shape: f32[64,1], index: 2, kind: input, shape index: {}]   ;;  %s2428_s3 = inlined_call_operand.vmem [shape: f32[4,64,64], index: 3, kind: input, shape index: {}]   ;;  %s2429_s4 = inlined_call_operand.vmem [shape: f32[4,64,1], index: 4, kind: input, shape index: {}]   ;;  %s2430_s5 = inlined_call_operand.vmem [shape: f32[8,64], index: 5, kind: input, shape index: {}]   ;;  %s2431_s6 = inlined_call_operand.vmem [shape: f32[8,1], index: 6, kind: input, shape index: {}]   ;;  %s2432_s7 = inlined_call_operand.hbm [shape: f32[8,256], index: 7, kind: output, shape index: {}]  }
   0x1   :  { %14 = vsyncpa [#allocation3 + $0x1], 0  ;;  %s2038_s24 = smov 0   ;;  %s2040_s25 = smov 0  }
   0x2   :  { %s2042_s26 = smov 0   ;;  %s2044_s27 = smov 0  }
   0x3 LB: > { %s2059_s28 = sadd.s32 4294967295, %s1991_s27   ;;  %s1402_s29 = sadd.s32 4294967294, %s1991_s27   ;;  %s1991_s27 = sphi %s2044_s27, %s2438_s27   ;;  %s1987_s26 = sphi %s2042_s26, %s2437_s26   ;;  %s1983_s25 = sphi %s2040_s25, %s2436_s25   ;;  %s1979_s24 = sphi %s2038_s24, %s2435_s24  }
   0x4   : > { %s2063_s30 = sadd.s32 1, %s1991_s27   ;;  %s179_s8 = sadd.s32 1, %s1987_s26 }
   0x5   : > { %s176_s9 = ssub.s32 %s1991_s27, %s2063_s30  ;;  %p189_p0 = scmp.ne.s32.totalorder %s1987_s26, %s1983_s25 }
   0x6   : > { %p177_p1 = scmp.eq.s32.totalorder %s176_s9, 0  ;;  %p190_p2 = scmp.eq.s32.totalorder %s2059_s28, 1 }
   0x7   : > { %p195_p3 = scmp.ne.s32.totalorder %s1983_s25, %s1979_s24  ;;  %p196_p4 = scmp.eq.s32.totalorder %s1402_s29, 1 }
   0x8   : > { %s2074_s10 = scalar_select %p177_p1, %s1987_s26, %s179_s8  }
   0x9   : > { %p2076_p5 = por %p190_p2, %p189_p0  ;;  %p2080_p6 = por %p196_p4, %p195_p3 }
   0xa   : > { %p1405_p7 = scmp.ge.s32.totalorder %s1991_s27, 1  ;;  %p239_p8 = scmp.lt.s32.totalorder %s1991_s27, 3 }
   0xc   : > { %p240_p9 = pnand %p1405_p7, %p239_p8 }
   0xd   : > { %p270_p10 = scmp.lt.s32.totalorder (!%p240_p9), %s2059_s28, 1  ;;  %v274_v0 = vld [vmem:[%s2426_s1] sm:$0xff] (!%p240_p9)  ;;  %vm331_vm0 = vcmask (!%p240_p9), 64512   ;;  %v1993_v2 = vmov (!%p240_p9), 0   ;;  %v285_v3 = vld [vmem:[%s2427_s2 + $0x10] sm:$0xff] (!%p240_p9)  ;;  %v284_v4 = vld [vmem:[%s2427_s2 + $0x8] sm:$0xff] (!%p240_p9) }
   0xe   : > { %243 = sbr.rel (%p240_p9) target bundleno = 1475 (0x5c3), region = 48  ;;  %v283_v1 = vld [vmem:[%s2427_s2] sm:$0xff] (!%p240_p9)  ;;  %1585 = vmatprep.mubr.msk.f32.mxu0 (!%p240_p9), %vm331_vm0, %v274_v0  ;;  %1847 = vset.pattern.permute.xlu0 (!%p240_p9), %v1993_v2  ;;  %v286_v5 = vld [vmem:[%s2427_s2 + $0x18] sm:$0xff] (!%p240_p9)  ;;  %v275_v7 = vld [vmem:[%s2426_s1 + $0x8] sm:$0xff] (!%p240_p9)  ;;  %vm525_vm1 = vcmask (!%p240_p9), 523264   ;;  %vm1995_vm2 = vmmov (!%p240_p9), 0  }
   0xf   : > { %293 = vperm.xlu0 (!%p240_p9), %1847, %v283_v1   ;;  %1848 = vset.pattern.permute.xlu1 (!%p240_p9), %v1993_v2  ;;  %v276_v8 = vld [vmem:[%s2426_s1 + $0x10] sm:$0xff] (!%p240_p9)  ;;  %v287_v9 = vld [vmem:[%s2427_s2 + $0x20] sm:$0xff] (!%p240_p9)  ;;  %v288_v10 = vld [vmem:[%s2427_s2 + $0x28] sm:$0xff] (!%p240_p9)  ;;  %s267_s14 = sand.u32 (!%p240_p9), 1, %s1983_s25   ;;  %s1498_s16 = sshll.u32 (!%p240_p9), %s2059_s28, 7 }
  0x10   : > { %303 = vperm.xlu1 (!%p240_p9), %1848, %v285_v3   ;;  %v277_v11 = vld [vmem:[%s2426_s1 + $0x18] sm:$0xff] (!%p240_p9)  ;;  %v278_v12 = vld [vmem:[%s2426_s1 + $0x20] sm:$0xff] (!%p240_p9)  ;;  %v289_v13 = vld [vmem:[%s2427_s2 + $0x30] sm:$0xff] (!%p240_p9)  ;;  %s1406_s15 = sshll.u32 (!%p240_p9), %s267_s14, 3  ;;  %s2383_s21 = scalar_lea.hbm (!%p240_p9), %s2432_s7, %s1498_s16 }
  0x11   : > { %v290_v14 = vld [vmem:[%s2427_s2 + $0x38] sm:$0xff] (!%p240_p9)  ;;  %v279_v15 = vld [vmem:[%s2426_s1 + $0x28] sm:$0xff] (!%p240_p9)  ;;  %v280_v16 = vld [vmem:[%s2426_s1 + $0x30] sm:$0xff] (!%p240_p9)  ;;  %s269_s18 = scalar_lea.vmem (!%p240_p9), [#allocation2], %s1406_s15 }
  0x12   : > { %v477_v17 = vld [vmem:[%s2429_s4] sm:$0xff] (!%p240_p9)  ;;  %v478_v18 = vld [vmem:[%s2429_s4 + $0x8] sm:$0xff] (!%p240_p9)  ;;  %v281_v19 = vld [vmem:[%s2426_s1 + $0x38] sm:$0xff] (!%p240_p9) }
  0x13   : > { %298 = vperm.xlu0 (!%p240_p9), %1847, %v284_v4   ;;  %v479_v20 = vld [vmem:[%s2429_s4 + $0x10] sm:$0xff] (!%p240_p9)  ;;  %v480_v21 = vld [vmem:[%s2429_s4 + $0x18] sm:$0xff] (!%p240_p9)  ;;  %v481_v22 = vld [vmem:[%s2429_s4 + $0x20] sm:$0xff] (!%p240_p9) }
  0x14   : > { %308 = vperm.xlu1 (!%p240_p9), %1848, %v286_v5   ;;  %v482_v23 = vld [vmem:[%s2429_s4 + $0x28] sm:$0xff] (!%p240_p9)  ;;  %v483_v24 = vld [vmem:[%s2429_s4 + $0x30] sm:$0xff] (!%p240_p9)  ;;  %v484_v25 = vld [vmem:[%s2429_s4 + $0x38] sm:$0xff] (!%p240_p9) }
  0x15   : > { %s271_s17 = scalar_select %p270_p10, %s2059_s28, 1  ;;  %v1432_v26 = vld [vmem:[%s2429_s4 + $0x40] sm:$0xff]  ;;  %v1433_v27 = vld [vmem:[%s2429_s4 + $0x48] sm:$0xff]  ;;  %v1434_v28 = vld [vmem:[%s2429_s4 + $0x50] sm:$0xff] }
  0x16   : > { %v1435_v29 = vld [vmem:[%s2429_s4 + $0x58] sm:$0xff]  ;;  %v1436_v30 = vld [vmem:[%s2429_s4 + $0x60] sm:$0xff]  ;;  %v1437_v31 = vld [vmem:[%s2429_s4 + $0x68] sm:$0xff]  ;;  %s1997_s28 = smov [#allocation2]  }
  0x17   : > { %s1407_s22 = sshll.u32 %s271_s17, 3  ;;  %313 = vperm.xlu0 %1847, %v287_v9   ;;  %v1438_v32 = vld [vmem:[%s2429_s4 + $0x70] sm:$0xff]  ;;  %v1439_v33 = vld [vmem:[%s2429_s4 + $0x78] sm:$0xff]  ;;  %v1456_v34 = vld [vmem:[%s2429_s4 + $0x80] sm:$0xff]  ;;  %s1343_s17 = sshll.u32 %s269_s18, 4  ;;  %s2385_s17 = int_to_ptr.vmem [resolvable:$true] %s1343_s17 }
  0x18   : > { %s273_s13 = scalar_lea.vmem %s2425_s0, %s1407_s22  ;;  %318 = vperm.xlu1 %1848, %v288_v10   ;;  %v1457_v35 = vld [vmem:[%s2429_s4 + $0x88] sm:$0xff]  ;;  %v1458_v36 = vld [vmem:[%s2429_s4 + $0x90] sm:$0xff]  ;;  %v1459_v37 = vld [vmem:[%s2429_s4 + $0x98] sm:$0xff]  ;;  %s1330_s22 = scalar_lea.sflag [#allocation3], %s267_s14 }
  0x19   : > { %v282_v6 = vld [vmem:[%s273_s13] sm:$0xff]  ;;  %v1461_v39 = vld [vmem:[%s2429_s4 + $0xa8] sm:$0xff]  ;;  %v1462_v40 = vld [vmem:[%s2429_s4 + $0xb0] sm:$0xff]  ;;  %s1929_s23 = scalar_lea.vmem %s2385_s17, 128  ;;  %s1933_s29 = sshll.u32 %s1997_s28, 4  ;;  %s1934_s29 = int_to_ptr.vmem [resolvable:$false] %s1933_s29 }
  0x1a   : > { %1583 = vmatprep.subr.mxu0 %v282_v6  ;;  %v1460_v38 = vld [vmem:[%s2429_s4 + $0xa0] sm:$0xff]  ;;  %v1463_v41 = vld [vmem:[%s2429_s4 + $0xb8] sm:$0xff]  ;;  %v1481_v43 = vld [vmem:[%s2429_s4 + $0xc8] sm:$0xff]  ;;  %p1930_p11 = scmp.ne.s32.totalorder %s2385_s17, %s1929_s23  ;;  %s1935_s8 = scalar_lea.vmem %s1934_s29, 256 }
  0x1b   : > { %1584 = vmatpush3.msra.mxu0 %v282_v6  ;;  %323 = vperm.xlu0 %1847, %v289_v13   ;;  %v1480_v42 = vld [vmem:[%s2429_s4 + $0xc0] sm:$0xff]  ;;  %v1482_v44 = vld [vmem:[%s2429_s4 + $0xd0] sm:$0xff]  ;;  %v1483_v45 = vld [vmem:[%s2429_s4 + $0xd8] sm:$0xff]  ;;  %p1936_p0 = scmp.lt.s32.totalorder %s2385_s17, %s1934_s29  ;;  %p1937_p1 = scmp.lt.s32.totalorder %s1935_s8, %s1929_s23 }
  0x1c   : > { %1586 = vmatmul.mubr.msk.f32.vlgmr.msra.gmra.mrb[0].mxu0 %vm331_vm0, %v275_v7  ;;  %328 = vperm.xlu1 %1848, %v290_v14   ;;  %v1484_v46 = vld [vmem:[%s2429_s4 + $0xe0] sm:$0xff]  ;;  %v1485_v47 = vld [vmem:[%s2429_s4 + $0xe8] sm:$0xff]  ;;  %v1486_v48 = vld [vmem:[%s2429_s4 + $0xf0] sm:$0xff]  ;;  %p1931_p12 = pnand %p1930_p11, %p2076_p5 }
  0x1d   : > { %1588 = vmatprep.mubr.msk.f32.mxu0 %vm331_vm0, %v276_v8  ;;  %v1487_v49 = vld [vmem:[%s2429_s4 + $0xf8] sm:$0xff]  ;;  %v1249_v50 = vld [vmem:[%s2431_s6] sm:$0xff]  ;;  %p1938_p2 = por %p1937_p1, %p1936_p0 }
  0x1e   : > { %v469_v51 = vld [vmem:[%s2428_s3] sm:$0xff]  ;;  %p1932_p13 = pneg %p1931_p12 }
  0x1f   : > { %487 = vperm.xlu0 %1847, %v477_v17   ;;  %1613 = vmatprep.mubr.msk.f32.mxu1 %vm525_vm1, %v469_v51 }
  0x20   : > { %1589 = vmatmul.mubr.msk.f32.gmra.mrb[2].mxu0 %vm331_vm0, %v277_v11  ;;  %492 = vperm.xlu1 %1848, %v478_v18   ;;  %p1939_p3 = pnand %p1938_p2, %p1932_p13 }
  0x21   : > { %1591 = vmatprep.mubr.msk.f32.mxu0 %vm331_vm0, %v278_v12 }
  0x23   : > { %497 = vperm.xlu0 %1847, %v479_v20  }
  0x24   : > { %1592 = vmatmul.mubr.msk.f32.gmra.mrb[4].mxu0 %vm331_vm0, %v279_v15  ;;  %502 = vperm.xlu1 %1848, %v480_v21  }
  0x25   : > { %1594 = vmatprep.mubr.msk.f32.mxu0 %vm331_vm0, %v280_v16 }
  0x27   : > { %507 = vperm.xlu0 %1847, %v481_v22  }
  0x28   : > { %1595 = vmatmul.mubr.msk.f32.gmra.mrb[6].mxu0 %vm331_vm0, %v281_v19  ;;  %512 = vperm.xlu1 %1848, %v482_v23  }
  0x2b   : > { %517 = vperm.xlu0 %1847, %v483_v24   ;;  %v470_v24 = vld [vmem:[%s2428_s3 + $0x8] sm:$0xff] }
  0x2c   : > { %522 = vperm.xlu1 %1848, %v484_v25   ;;  %v471_v25 = vld [vmem:[%s2428_s3 + $0x10] sm:$0xff] }
  0x2f   : > { %683 = vperm.xlu0 %1847, %v1432_v26   ;;  %v472_v26 = vld [vmem:[%s2428_s3 + $0x18] sm:$0xff] }
  0x30   : > { %688 = vperm.xlu1 %1848, %v1433_v27   ;;  %v473_v27 = vld [vmem:[%s2428_s3 + $0x20] sm:$0xff] }
  0x33   : > { %693 = vperm.xlu0 %1847, %v1434_v28   ;;  %v474_v28 = vld [vmem:[%s2428_s3 + $0x28] sm:$0xff] }
  0x34   : > { %698 = vperm.xlu1 %1848, %v1435_v29   ;;  %v475_v29 = vld [vmem:[%s2428_s3 + $0x30] sm:$0xff] }
  0x37   : > { %703 = vperm.xlu0 %1847, %v1436_v30   ;;  %v476_v30 = vld [vmem:[%s2428_s3 + $0x38] sm:$0xff] }
  0x38   : > { %708 = vperm.xlu1 %1848, %v1437_v31   ;;  %v1424_v31 = vld [vmem:[%s2428_s3 + $0x40] sm:$0xff] }
  0x39   : > { %1641 = vmatprep.mubr.msk.f32.mxu0 %vm525_vm1, %v1424_v31 }
  0x3b   : > { %713 = vperm.xlu0 %1847, %v1438_v32  }
  0x3c   : > { %718 = vperm.xlu1 %1848, %v1439_v33  }
  0x3f   : > { %878 = vperm.xlu0 %1847, %v1456_v34  }
  0x40   : > { %883 = vperm.xlu1 %1848, %v1457_v35  }
  0x43   : > { %888 = vperm.xlu0 %1847, %v1458_v36  }
  0x44   : > { %893 = vperm.xlu1 %1848, %v1459_v37  }
  0x47   : > { %898 = vperm.xlu0 %1847, %v1460_v38  }
  0x48   : > { %903 = vperm.xlu1 %1848, %v1461_v39  }
  0x4b   : > { %908 = vperm.xlu0 %1847, %v1462_v40  }
  0x4c   : > { %913 = vperm.xlu1 %1848, %v1463_v41  }
  0x4f   : > { %1073 = vperm.xlu0 %1847, %v1480_v42  }
  0x50   : > { %1078 = vperm.xlu1 %1848, %v1481_v43  }
  0x53   : > { %1083 = vperm.xlu0 %1847, %v1482_v44  }
  0x54   : > { %1088 = vperm.xlu1 %1848, %v1483_v45  }
  0x57   : > { %1093 = vperm.xlu0 %1847, %v1484_v46  }
  0x58   : > { %1098 = vperm.xlu1 %1848, %v1485_v47  }
  0x5b   : > { %1103 = vperm.xlu0 %1847, %v1486_v48  }
  0x5c   : > { %1108 = vperm.xlu1 %1848, %v1487_v49  }
  0x5f   : > { %1252 = vperm.xlu0 %1847, %v1249_v50  }
  0x8e   : > { %v294_v52 = vpop.permute.xlu0 %293 }
  0x8f   : > { %v304_v53 = vpop.permute.xlu1 %303 }
  0x92   : > { %v299_v54 = vpop.permute.xlu0 %298 }
  0x93   : > { %v309_v55 = vpop.permute.xlu1 %308 }
  0x96   : > { %v314_v1 = vpop.permute.xlu0 %313 }
  0x97   : > { %v319_v63 = vpop.permute.xlu1 %318 }
  0x9a   : > { %v324_v9 = vpop.permute.xlu0 %323 }
  0x9b   : > { %v329_v6 = vpop.permute.xlu1 %328 }
  0x9e   : > { %v488_v33 = vpop.permute.xlu0 %487 }
  0x9f   : > { %v493_v32 = vpop.permute.xlu1 %492 }
  0xa2   : > { %v498_v36 = vpop.permute.xlu0 %497 }
  0xa3   : > { %v503_v34 = vpop.permute.xlu1 %502 }
  0xa6   : > { %v508_v45 = vpop.permute.xlu0 %507 }
  0xa7   : > { %v513_v43 = vpop.permute.xlu1 %512 }
  0xab   : > { %v523_v50 = vpop.permute.xlu1 %522 }
  0xef   : > { %v1587_v56 = vpop.f32.mrb[0].mxu0 }
  0xf0   : > { %v428_v57 = vadd.f32 %v1587_v56, %v299_v54  ;;  %v422_v58 = vpop.f32.mrb[1].mxu0 }
  0xf1   : > { %v423_v59 = vadd.f32 %v422_v58, %v294_v52 }
  0xf2   : > { %1849 = vtanh.f32 %v428_v57 }
  0xf3   : > { %1851 = vtanh.f32 %v423_v59  ;;  %v1590_v60 = vpop.f32.mrb[2].mxu0 }
  0xf4   : > { %v438_v61 = vadd.f32 %v1590_v60, %v309_v55  ;;  %v432_v62 = vpop.f32.mrb[3].mxu0 }
  0xf5   : > { %v433_v0 = vadd.f32 %v432_v62, %v304_v53  ;;  %v518_v53 = vpop.permute.xlu0 %517 }
  0xf6   : > { %1853 = vtanh.f32 %v438_v61 }
  0xf7   : > { %1855 = vtanh.f32 %v433_v0  ;;  %v1593_v2 = vpop.f32.mrb[4].mxu0 }
  0xf8   : > { %v448_v3 = vadd.f32 %v1593_v2, %v319_v63  ;;  %v442_v4 = vpop.f32.mrb[5].mxu0 }
  0xf9   : > { %v443_v5 = vadd.f32 %v442_v4, %v314_v1  ;;  %v1425_v4 = vld [vmem:[%s2428_s3 + $0x48] sm:$0xff] }
  0xfa   : > { %1857 = vtanh.f32 %v448_v3 }
  0xfb   : > { %1859 = vtanh.f32 %v443_v5  ;;  %v1596_v7 = vpop.f32.mrb[6].mxu0  ;;  %v1426_v5 = vld [vmem:[%s2428_s3 + $0x50] sm:$0xff] }
  0xfc   : > { %v1850_v8 = vpop.eup %1849  ;;  %v458_v10 = vadd.f32 %v1596_v7, %v329_v6  ;;  %v452_v11 = vpop.f32.mrb[7].mxu0  ;;  %v1427_v6 = vld [vmem:[%s2428_s3 + $0x58] sm:$0xff]  ;;  %v1428_v7 = vld [vmem:[%s2428_s3 + $0x60] sm:$0xff] }
  0xfd   : > { %v1852_v12 = vpop.eup %1851  ;;  %v453_v13 = vadd.f32 %v452_v11, %v324_v9  ;;  %v1430_v9 = vld [vmem:[%s2428_s3 + $0x70] sm:$0xff]  ;;  %v1448_v11 = vld [vmem:[%s2428_s3 + $0x80] sm:$0xff] }
  0xfe   : > { %1861 = vtanh.f32 %v458_v10  ;;  %v1728_v14 = vpack.c.bf16 %v1850_v8, %v1852_v12  ;;  %v1429_v8 = vld [vmem:[%s2428_s3 + $0x68] sm:$0xff]  ;;  %v1431_v10 = vld [vmem:[%s2428_s3 + $0x78] sm:$0xff]  ;;  %v689_v12 = vpop.permute.xlu1 %688 }
  0xff   : > { %1863 = vtanh.f32 %v453_v13  ;;  %v684_v13 = vpop.permute.xlu0 %683 }
 0x100   : > { %v1854_v15 = vpop.eup %1853  ;;  %1729 = vmatprep.subr.bf16.mxu1 %v1728_v14 }
 0x101   : > { %v1856_v16 = vpop.eup %1855  ;;  %1731 = vmatpush3.bf16.msra.mxu1 %v1728_v14 }
 0x102   : > { %v1732_v17 = vpack.c.bf16 %v1854_v15, %v1856_v16  ;;  %v699_v14 = vpop.permute.xlu1 %698 }
 0x103   : > { %v694_v16 = vpop.permute.xlu0 %693 }
 0x104   : > { %v1858_v18 = vpop.eup %1857  ;;  %1733 = vmatprep.subr.bf16.mxu1 %v1732_v17 }
 0x105   : > { %v1860_v19 = vpop.eup %1859  ;;  %1735 = vmatpush3.bf16.msra.mxu1 %v1732_v17 }
 0x106   : > { %v1736_v20 = vpack.c.bf16 %v1858_v18, %v1860_v19 }
 0x108   : > { %v1862_v21 = vpop.eup %1861  ;;  %1737 = vmatprep.subr.bf16.mxu1 %v1736_v20 }
 0x109   : > { %v1864_v22 = vpop.eup %1863  ;;  %1739 = vmatpush3.bf16.msra.mxu1 %v1736_v20 }
 0x10a   : > { %v1740_v23 = vpack.c.bf16 %v1862_v21, %v1864_v22 }
 0x10c   : > { %1741 = vmatprep.subr.bf16.mxu1 %v1740_v23 }
 0x10d   : > { %1743 = vmatpush3.bf16.msra.mxu1 %v1740_v23  ;;  %v709_v23 = vpop.permute.xlu1 %708 }
 0x110   : > { %1614 = vmatmul.mubr.msk.f32.vlgmr.msra.gmra.mrb[0].mxu1 %vm525_vm1, %v470_v24 }
 0x111   : > { %1616 = vmatprep.mubr.msk.f32.mxu1 %vm525_vm1, %v471_v25  ;;  %v704_v25 = vpop.permute.xlu0 %703 }
 0x114   : > { %1617 = vmatmul.mubr.msk.f32.gmra.mrb[2].mxu1 %vm525_vm1, %v472_v26 }
 0x115   : > { %1619 = vmatprep.mubr.msk.f32.mxu1 %vm525_vm1, %v473_v27 }
 0x118   : > { %1620 = vmatmul.mubr.msk.f32.gmra.mrb[4].mxu1 %vm525_vm1, %v474_v28 }
 0x119   : > { %1622 = vmatprep.mubr.msk.f32.mxu1 %vm525_vm1, %v475_v29 }
 0x11c   : > { %1623 = vmatmul.mubr.msk.f32.gmra.mrb[6].mxu1 %vm525_vm1, %v476_v30  ;;  %v719_v30 = vpop.permute.xlu1 %718 }
 0x11d   : > { %1669 = vmatprep.mubr.msk.f32.mxu1 %vm525_vm1, %v1448_v11 }
 0x1e3   : > { %v1615_v35 = vpop.f32.mrb[0].mxu1 }
 0x1e4   : > { %v622_v37 = vadd.f32 %v1615_v35, %v493_v32  ;;  %v616_v38 = vpop.f32.mrb[1].mxu1 }
 0x1e5   : > { %v617_v39 = vadd.f32 %v616_v38, %v488_v33  ;;  %v714_v33 = vpop.permute.xlu0 %713 }
 0x1e6   : > { %1865 = vtanh.f32 %v622_v37 }
 0x1e7   : > { %1867 = vtanh.f32 %v617_v39  ;;  %v1618_v40 = vpop.f32.mrb[2].mxu1 }
 0x1e8   : > { %v632_v41 = vadd.f32 %v1618_v40, %v503_v34  ;;  %v626_v42 = vpop.f32.mrb[3].mxu1 }
 0x1e9   : > { %v627_v44 = vadd.f32 %v626_v42, %v498_v36 }
 0x1ea   : > { %1869 = vtanh.f32 %v632_v41 }
 0x1eb   : > { %1871 = vtanh.f32 %v627_v44  ;;  %v1621_v46 = vpop.f32.mrb[4].mxu1 }
 0x1ec   : > { %v642_v47 = vadd.f32 %v1621_v46, %v513_v43  ;;  %v636_v48 = vpop.f32.mrb[5].mxu1 }
 0x1ed   : > { %v637_v49 = vadd.f32 %v636_v48, %v508_v45  ;;  %v1449_v48 = vld [vmem:[%s2428_s3 + $0x88] sm:$0xff] }
 0x1ee   : > { %1873 = vtanh.f32 %v642_v47 }
 0x1ef   : > { %1875 = vtanh.f32 %v637_v49  ;;  %v1624_v51 = vpop.f32.mrb[6].mxu1  ;;  %v1450_v49 = vld [vmem:[%s2428_s3 + $0x90] sm:$0xff] }
 0x1f0   : > { %v1866_v52 = vpop.eup %1865  ;;  %v652_v54 = vadd.f32 %v1624_v51, %v523_v50  ;;  %v646_v55 = vpop.f32.mrb[7].mxu1  ;;  %v1451_v50 = vld [vmem:[%s2428_s3 + $0x98] sm:$0xff]  ;;  %v1452_v51 = vld [vmem:[%s2428_s3 + $0xa0] sm:$0xff] }
 0x1f1   : > { %v1868_v56 = vpop.eup %1867  ;;  %v647_v57 = vadd.f32 %v646_v55, %v518_v53  ;;  %v1454_v53 = vld [vmem:[%s2428_s3 + $0xb0] sm:$0xff]  ;;  %v1472_v55 = vld [vmem:[%s2428_s3 + $0xc0] sm:$0xff] }
 0x1f2   : > { %1877 = vtanh.f32 %v652_v54  ;;  %v1744_v58 = vpack.c.bf16 %v1866_v52, %v1868_v56  ;;  %v1453_v52 = vld [vmem:[%s2428_s3 + $0xa8] sm:$0xff]  ;;  %v1455_v54 = vld [vmem:[%s2428_s3 + $0xb8] sm:$0xff]  ;;  %v884_v56 = vpop.permute.xlu1 %883 }
 0x1f3   : > { %1879 = vtanh.f32 %v647_v57  ;;  %v879_v57 = vpop.permute.xlu0 %878 }
 0x1f4   : > { %v1870_v59 = vpop.eup %1869  ;;  %1745 = vmatprep.subr.bf16.mxu0 %v1744_v58 }
 0x1f5   : > { %v1872_v60 = vpop.eup %1871  ;;  %1747 = vmatpush3.bf16.msra.mxu0 %v1744_v58 }
 0x1f6   : > { %v1748_v61 = vpack.c.bf16 %v1870_v59, %v1872_v60  ;;  %v894_v58 = vpop.permute.xlu1 %893 }
 0x1f7   : > { %v889_v60 = vpop.permute.xlu0 %888 }
 0x1f8   : > { %v1874_v62 = vpop.eup %1873  ;;  %1749 = vmatprep.subr.bf16.mxu0 %v1748_v61 }
 0x1f9   : > { %v1876_v63 = vpop.eup %1875  ;;  %1751 = vmatpush3.bf16.msra.mxu0 %v1748_v61 }
 0x1fa   : > { %v1752_v0 = vpack.c.bf16 %v1874_v62, %v1876_v63 }
 0x1fc   : > { %v1878_v1 = vpop.eup %1877  ;;  %1753 = vmatprep.subr.bf16.mxu0 %v1752_v0 }
 0x1fd   : > { %v1880_v2 = vpop.eup %1879  ;;  %1755 = vmatpush3.bf16.msra.mxu0 %v1752_v0 }
 0x1fe   : > { %v1756_v3 = vpack.c.bf16 %v1878_v1, %v1880_v2 }
 0x200   : > { %1757 = vmatprep.subr.bf16.mxu0 %v1756_v3 }
 0x201   : > { %1759 = vmatpush3.bf16.msra.mxu0 %v1756_v3  ;;  %v904_v3 = vpop.permute.xlu1 %903 }
 0x204   : > { %1642 = vmatmul.mubr.msk.f32.vlgmr.msra.gmra.mrb[8].mxu0 %vm525_vm1, %v1425_v4 }
 0x205   : > { %1644 = vmatprep.mubr.msk.f32.mxu0 %vm525_vm1, %v1426_v5  ;;  %v899_v5 = vpop.permute.xlu0 %898 }
 0x208   : > { %1645 = vmatmul.mubr.msk.f32.gmra.mrb[10].mxu0 %vm525_vm1, %v1427_v6 }
 0x209   : > { %1647 = vmatprep.mubr.msk.f32.mxu0 %vm525_vm1, %v1428_v7 }
 0x20c   : > { %1648 = vmatmul.mubr.msk.f32.gmra.mrb[12].mxu0 %vm525_vm1, %v1429_v8 }
 0x20d   : > { %1650 = vmatprep.mubr.msk.f32.mxu0 %vm525_vm1, %v1430_v9 }
 0x210   : > { %1651 = vmatmul.mubr.msk.f32.gmra.mrb[14].mxu0 %vm525_vm1, %v1431_v10  ;;  %v914_v10 = vpop.permute.xlu1 %913 }
 0x211   : > { %1697 = vmatprep.mubr.msk.f32.mxu0 %vm525_vm1, %v1472_v55 }
 0x2d7   : > { %v1643_v15 = vpop.f32.mrb[8].mxu0 }
 0x2d8   : > { %v817_v17 = vadd.f32 %v1643_v15, %v689_v12  ;;  %v811_v18 = vpop.f32.mrb[9].mxu0 }
 0x2d9   : > { %v812_v19 = vadd.f32 %v811_v18, %v684_v13  ;;  %v909_v13 = vpop.permute.xlu0 %908 }
 0x2da   : > { %1881 = vtanh.f32 %v817_v17 }
 0x2db   : > { %1883 = vtanh.f32 %v812_v19  ;;  %v1646_v20 = vpop.f32.mrb[10].mxu0 }
 0x2dc   : > { %v827_v21 = vadd.f32 %v1646_v20, %v699_v14  ;;  %v821_v22 = vpop.f32.mrb[11].mxu0 }
 0x2dd   : > { %v822_v24 = vadd.f32 %v821_v22, %v694_v16 }
 0x2de   : > { %1885 = vtanh.f32 %v827_v21 }
 0x2df   : > { %1887 = vtanh.f32 %v822_v24  ;;  %v1649_v26 = vpop.f32.mrb[12].mxu0 }
 0x2e0   : > { %v837_v27 = vadd.f32 %v1649_v26, %v709_v23  ;;  %v831_v28 = vpop.f32.mrb[13].mxu0 }
 0x2e1   : > { %v832_v29 = vadd.f32 %v831_v28, %v704_v25  ;;  %v1473_v28 = vld [vmem:[%s2428_s3 + $0xc8] sm:$0xff] }
 0x2e2   : > { %1889 = vtanh.f32 %v837_v27 }
 0x2e3   : > { %1891 = vtanh.f32 %v832_v29  ;;  %v1652_v31 = vpop.f32.mrb[14].mxu0  ;;  %v1474_v29 = vld [vmem:[%s2428_s3 + $0xd0] sm:$0xff] }
 0x2e4   : > { %v1882_v32 = vpop.eup %1881  ;;  %v847_v34 = vadd.f32 %v1652_v31, %v719_v30  ;;  %v841_v35 = vpop.f32.mrb[15].mxu0  ;;  %v1475_v30 = vld [vmem:[%s2428_s3 + $0xd8] sm:$0xff]  ;;  %v1476_v31 = vld [vmem:[%s2428_s3 + $0xe0] sm:$0xff] }
 0x2e5   : > { %v1884_v36 = vpop.eup %1883  ;;  %v842_v37 = vadd.f32 %v841_v35, %v714_v33  ;;  %v1478_v33 = vld [vmem:[%s2428_s3 + $0xf0] sm:$0xff]  ;;  %v1994_v35 = vmov 0.0|0.0  }
 0x2e6   : > { %1893 = vtanh.f32 %v847_v34  ;;  %v1760_v38 = vpack.c.bf16 %v1882_v32, %v1884_v36  ;;  %v1477_v32 = vld [vmem:[%s2428_s3 + $0xe8] sm:$0xff]  ;;  %v1479_v34 = vld [vmem:[%s2428_s3 + $0xf8] sm:$0xff]  ;;  %v1996_v36 = vmov 0.0  }
 0x2e7   : > { %1895 = vtanh.f32 %v842_v37  ;;  %v1079_v37 = vpop.permute.xlu1 %1078 }
 0x2e8   : > { %v1886_v39 = vpop.eup %1885  ;;  %1761 = vmatprep.subr.bf16.mxu1 %v1760_v38 }
 0x2e9   : > { %v1888_v40 = vpop.eup %1887  ;;  %1763 = vmatpush3.bf16.msra.mxu1 %v1760_v38  ;;  %v1074_v38 = vpop.permute.xlu0 %1073 }
 0x2ea   : > { %v1764_v41 = vpack.c.bf16 %v1886_v39, %v1888_v40 }
 0x2eb   : > { %v1089_v39 = vpop.permute.xlu1 %1088 }
 0x2ec   : > { %v1890_v42 = vpop.eup %1889  ;;  %1765 = vmatprep.subr.bf16.mxu1 %v1764_v41 }
 0x2ed   : > { %v1892_v43 = vpop.eup %1891  ;;  %1767 = vmatpush3.bf16.msra.mxu1 %v1764_v41  ;;  %v1084_v41 = vpop.permute.xlu0 %1083 }
 0x2ee   : > { %v1768_v44 = vpack.c.bf16 %v1890_v42, %v1892_v43 }
 0x2f0   : > { %v1894_v45 = vpop.eup %1893  ;;  %1769 = vmatprep.subr.bf16.mxu1 %v1768_v44 }
 0x2f1   : > { %v1896_v46 = vpop.eup %1895  ;;  %1771 = vmatpush3.bf16.msra.mxu1 %v1768_v44 }
 0x2f2   : > { %v1772_v47 = vpack.c.bf16 %v1894_v45, %v1896_v46 }
 0x2f4   : > { %1773 = vmatprep.subr.bf16.mxu1 %v1772_v47 }
 0x2f5   : > { %1775 = vmatpush3.bf16.msra.mxu1 %v1772_v47 }
 0x2f6   : > { %1792 = vmatprep.subr.bf16.mxu1 %v1994_v35 }
 0x2f8   : > { %1670 = vmatmul.mubr.msk.f32.vlgmr.msra.gmra.mrb[8].mxu1 %vm525_vm1, %v1449_v48  ;;  %v1099_v48 = vpop.permute.xlu1 %1098 }
 0x2f9   : > { %1672 = vmatprep.mubr.msk.f32.mxu1 %vm525_vm1, %v1450_v49 }
 0x2fc   : > { %1673 = vmatmul.mubr.msk.f32.gmra.mrb[10].mxu1 %vm525_vm1, %v1451_v50  ;;  %v1094_v50 = vpop.permute.xlu0 %1093  ;;  %v1109_v55 = vpop.permute.xlu1 %1108 }
 0x2fd   : > { %1675 = vmatprep.mubr.msk.f32.mxu1 %vm525_vm1, %v1452_v51 }
 0x300   : > { %1676 = vmatmul.mubr.msk.f32.gmra.mrb[12].mxu1 %vm525_vm1, %v1453_v52 }
 0x301   : > { %1678 = vmatprep.mubr.msk.f32.mxu1 %vm525_vm1, %v1454_v53 }
 0x304   : > { %1679 = vmatmul.mubr.msk.f32.gmra.mrb[14].mxu1 %vm525_vm1, %v1455_v54 }
 0x305   : > { %1725 = vmatprep.mubr.msk.f32.mxu1 %vm1995_vm2, %v1996_v36 }
 0x3cb   : > { %v1671_v59 = vpop.f32.mrb[8].mxu1 }
 0x3cc   : > { %v1012_v61 = vadd.f32 %v1671_v59, %v884_v56  ;;  %v1006_v62 = vpop.f32.mrb[9].mxu1 }
 0x3cd   : > { %v1007_v63 = vadd.f32 %v1006_v62, %v879_v57 }
 0x3ce   : > { %1897 = vtanh.f32 %v1012_v61 }
 0x3cf   : > { %1899 = vtanh.f32 %v1007_v63  ;;  %v1674_v0 = vpop.f32.mrb[10].mxu1 }
 0x3d0   : > { %v1022_v1 = vadd.f32 %v1674_v0, %v894_v58  ;;  %v1016_v2 = vpop.f32.mrb[11].mxu1  ;;  %v1104_v58 = vpop.permute.xlu0 %1103 }
 0x3d1   : > { %v1017_v4 = vadd.f32 %v1016_v2, %v889_v60 }
 0x3d2   : > { %1901 = vtanh.f32 %v1022_v1 }
 0x3d3   : > { %1903 = vtanh.f32 %v1017_v4  ;;  %v1677_v6 = vpop.f32.mrb[12].mxu1 }
 0x3d4   : > { %v1032_v7 = vadd.f32 %v1677_v6, %v904_v3  ;;  %v1026_v8 = vpop.f32.mrb[13].mxu1 }
 0x3d5   : > { %v1027_v9 = vadd.f32 %v1026_v8, %v899_v5 }
 0x3d6   : > { %1905 = vtanh.f32 %v1032_v7 }
 0x3d7   : > { %1907 = vtanh.f32 %v1027_v9  ;;  %v1680_v11 = vpop.f32.mrb[14].mxu1  ;;  %v1248_v9 = vld [vmem:[%s2430_s5] sm:$0xff] }
 0x3d8   : > { %v1898_v12 = vpop.eup %1897  ;;  %v1042_v14 = vadd.f32 %v1680_v11, %v914_v10  ;;  %v1036_v15 = vpop.f32.mrb[15].mxu1 }
 0x3d9   : > { %v1900_v16 = vpop.eup %1899  ;;  %v1037_v17 = vadd.f32 %v1036_v15, %v909_v13  ;;  %v1253_v10 = vpop.permute.xlu0 %1252 }
 0x3da   : > { %1909 = vtanh.f32 %v1042_v14  ;;  %v1776_v18 = vpack.c.bf16 %v1898_v12, %v1900_v16 }
 0x3db   : > { %1911 = vtanh.f32 %v1037_v17 }
 0x3dc   : > { %v1902_v19 = vpop.eup %1901  ;;  %1777 = vmatprep.subr.bf16.mxu0 %v1776_v18 }
 0x3dd   : > { %v1904_v20 = vpop.eup %1903  ;;  %1779 = vmatpush3.bf16.msra.mxu0 %v1776_v18 }
 0x3de   : > { %v1780_v21 = vpack.c.bf16 %v1902_v19, %v1904_v20 }
 0x3e0   : > { %v1906_v22 = vpop.eup %1905  ;;  %1781 = vmatprep.subr.bf16.mxu0 %v1780_v21 }
 0x3e1   : > { %v1908_v23 = vpop.eup %1907  ;;  %1783 = vmatpush3.bf16.msra.mxu0 %v1780_v21 }
 0x3e2   : > { %v1784_v24 = vpack.c.bf16 %v1906_v22, %v1908_v23 }
 0x3e4   : > { %v1910_v25 = vpop.eup %1909  ;;  %1785 = vmatprep.subr.bf16.mxu0 %v1784_v24 }
 0x3e5   : > { %v1912_v26 = vpop.eup %1911  ;;  %1787 = vmatpush3.bf16.msra.mxu0 %v1784_v24 }
 0x3e6   : > { %v1788_v27 = vpack.c.bf16 %v1910_v25, %v1912_v26 }
 0x3e8   : > { %1789 = vmatprep.subr.bf16.mxu0 %v1788_v27 }
 0x3e9   : > { %1791 = vmatpush3.bf16.msra.mxu0 %v1788_v27 }
 0x3ec   : > { %1698 = vmatmul.mubr.msk.f32.vlgmr.msra.gmra.mrb[16].mxu0 %vm525_vm1, %v1473_v28 }
 0x3ed   : > { %1700 = vmatprep.mubr.msk.f32.mxu0 %vm525_vm1, %v1474_v29 }
 0x3f0   : > { %1701 = vmatmul.mubr.msk.f32.gmra.mrb[18].mxu0 %vm525_vm1, %v1475_v30 }
 0x3f1   : > { %1703 = vmatprep.mubr.msk.f32.mxu0 %vm525_vm1, %v1476_v31 }
 0x3f4   : > { %1704 = vmatmul.mubr.msk.f32.gmra.mrb[20].mxu0 %vm525_vm1, %v1477_v32 }
 0x3f5   : > { %1706 = vmatprep.mubr.msk.f32.mxu0 %vm525_vm1, %v1478_v33 }
 0x3f8   : > { %1707 = vmatmul.mubr.msk.f32.gmra.mrb[22].mxu0 %vm525_vm1, %v1479_v34 }
 0x4bf   : > { %v1699_v40 = vpop.f32.mrb[16].mxu0 }
 0x4c0   : > { %v1207_v42 = vadd.f32 %v1699_v40, %v1079_v37  ;;  %v1201_v43 = vpop.f32.mrb[17].mxu0 }
 0x4c1   : > { %v1202_v44 = vadd.f32 %v1201_v43, %v1074_v38 }
 0x4c2   : > { %1913 = vtanh.f32 %v1207_v42 }
 0x4c3   : > { %1915 = vtanh.f32 %v1202_v44  ;;  %v1702_v45 = vpop.f32.mrb[18].mxu0 }
 0x4c4   : > { %v1217_v46 = vadd.f32 %v1702_v45, %v1089_v39  ;;  %v1211_v47 = vpop.f32.mrb[19].mxu0 }
 0x4c5   : > { %v1212_v49 = vadd.f32 %v1211_v47, %v1084_v41 }
 0x4c6   : > { %1917 = vtanh.f32 %v1217_v46 }
 0x4c7   : > { %1919 = vtanh.f32 %v1212_v49  ;;  %v1705_v51 = vpop.f32.mrb[20].mxu0 }
 0x4c8   : > { %v1227_v52 = vadd.f32 %v1705_v51, %v1099_v48  ;;  %v1221_v53 = vpop.f32.mrb[21].mxu0 }
 0x4c9   : > { %v1222_v54 = vadd.f32 %v1221_v53, %v1094_v50 }
 0x4ca   : > { %1921 = vtanh.f32 %v1227_v52 }
 0x4cb   : > { %1923 = vtanh.f32 %v1222_v54  ;;  %v1708_v56 = vpop.f32.mrb[22].mxu0 }
 0x4cc   : > { %v1914_v57 = vpop.eup %1913  ;;  %v1237_v59 = vadd.f32 %v1708_v56, %v1109_v55  ;;  %v1231_v60 = vpop.f32.mrb[23].mxu0 }
 0x4cd   : > { %v1916_v61 = vpop.eup %1915  ;;  %v1232_v62 = vadd.f32 %v1231_v60, %v1104_v58 }
 0x4ce   : > { %1925 = vtanh.f32 %v1237_v59  ;;  %v1793_v63 = vpack.c.bf16 %v1914_v57, %v1916_v61 }
 0x4cf   : > { %1927 = vtanh.f32 %v1232_v62 }
 0x4d0   : > { %v1918_v0 = vpop.eup %1917  ;;  %1794 = vmatpush3.bf16.msra.mxu1 %v1793_v63 }
 0x4d1   : > { %v1920_v1 = vpop.eup %1919  ;;  %1795 = vmatprep.subr.bf16.mxu1 %v1994_v35 }
 0x4d2   : > { %v1796_v2 = vpack.c.bf16 %v1918_v0, %v1920_v1 }
 0x4d4   : > { %v1922_v3 = vpop.eup %1921  ;;  %1797 = vmatpush3.bf16.msra.mxu1 %v1796_v2 }
 0x4d5   : > { %v1924_v4 = vpop.eup %1923  ;;  %1798 = vmatprep.subr.bf16.mxu1 %v1994_v35 }
 0x4d6   : > { %v1799_v5 = vpack.c.bf16 %v1922_v3, %v1924_v4 }
 0x4d8   : > { %v1926_v6 = vpop.eup %1925  ;;  %1800 = vmatpush3.bf16.msra.mxu1 %v1799_v5 }
 0x4d9   : > { %v1928_v7 = vpop.eup %1927  ;;  %1801 = vmatprep.subr.bf16.mxu1 %v1994_v35 }
 0x4da   : > { %v1802_v8 = vpack.c.bf16 %v1926_v6, %v1928_v7 }
 0x4dc   : > { %1803 = vmatpush3.bf16.msra.mxu1 %v1802_v8 }
 0x4df   : > { %1726 = vmatmul.mubr.msk.f32.vlgmr.msra.gmra.mrb[16].mxu1 %vm525_vm1, %v1248_v9 }
 0x5b2   : > { %v1324_v11 = vpop.f32.mrb[16].mxu1 }
 0x5b3   : > { %v1325_v12 = vadd.f32 %v1324_v11, %v1253_v10  ;;  %v1727_v13 = vpop.f32.mrb[17].mxu1 }
 0x5b5   : > { %1328 = vst [vmem:[%s269_s18] sm:$0xff] %v1325_v12 }
 0x5b6   : > { %1942 = shalt.err (!%p1939_p3)
}
 0x5b7   : > { %s1943_s9 = scalar_lea.hbm %s2383_s21, 128  ;;  %s1947_s15 = scalar_lea.hbm %s2432_s7, 256 }
 0x5b8   : > { %p1944_p4 = scmp.ne.s32.totalorder %s2383_s21, %s1943_s9  ;;  %p1948_p9 = scmp.lt.u32.totalorder %s2383_s21, %s2432_s7 }
 0x5b9   : > { %p1949_p10 = scmp.lt.u32.totalorder %s1947_s15, %s1943_s9  ;;  %p1951_p12 = scmp.lt.u32.totalorder %s1943_s9, %s2383_s21 }
 0x5ba   : > { %p1945_p7 = pnand %p1944_p4, %p2076_p5 }
 0x5bb   : > { %p1950_p11 = por %p1949_p10, %p1948_p9 }
 0x5bc   : > { %p1946_p8 = pneg %p1945_p7 }
 0x5bd   : > { %p1952_p13 = por %p1951_p12, %p1950_p11 }
 0x5bf   : > { %p1953_p0 = pnand %p1952_p13, %p1946_p8 }
 0x5c1   : > { %1956 = shalt.err (!%p1953_p0)
}
 0x5c2   : > { %1804 = dma.vmem_to_hbm [thread:$0]  (%p2076_p5), %s2385_s17, 128, %s2383_s21, %s1330_s22  }
 0x5c3 PF: > { %p1810_p1 = scmp.ge.s32.totalorder %s1991_s27, 2  ;;  %s1355_s19 = sand.u32 1, %s1979_s24  }
 0x5c4   : > { %s1356_s20 = scalar_lea.sflag [#allocation3], %s1355_s19 }
 0x5c5   : > { %p1807_p2 = pnand %p1810_p1, %p2080_p6 }
 0x5c7   : > { %1974 = dma.done.wait (!%p1807_p2), %s1356_s20, 128  }
 0x5c8   : > { %1976 = vsyncadd (!%p1807_p2), %s1356_s20, 4294967168  ;;  %p17_p3 = scmp.ge.s32.totalorder %s2063_s30, 4   ;;  %s2435_s24 = smov %s1983_s25 }
 0x5c9   : > { %s2436_s25 = smov %s1987_s26  ;;  %s2437_s26 = smov %s2074_s10 }
 0x5ca   : > { %s2438_s27 = smov %s2063_s30  ;;  %19 = sbr.rel (!%p17_p3) target bundleno = 3 (0x3), region = 89 }
 0x5d1   :  { %1361 = vsyncpa [#allocation3], 1 }
 0x5d2   :  { %1363 = vsyncpa [#allocation3 + $0x1], 1 }

</bundles_post_ra>
